<compile_context>
chip_gen: v7x
topology: tpu7x:2x2x1
jax: 0.10.0
libtpu: 0.0.40
codegen_flags: <defaults>
</compile_context>

<pallas_src>
import jax
import jax.numpy as jnp
from jax import lax
from jax.experimental import pallas as pl
from jax.experimental.pallas import tpu as pltpu


def fused_dynamic_lstm_kernel(x_ref, lens_ref, wih_ref, b_ref, whh_ref,
                              hcat_ref, h_scr, c_scr, xg_scr):
    # x_ref    : [chunk_L, block_B, 2E] bf16  embedded inputs for this chunk
    # lens_ref : [block_B, 2Hp] int32  per-state-column sequence length
    # wih_ref  : [2E, 8Hp]  bf16  block-diagonal input weights (+ gate reorder)
    # b_ref    : [1, 8Hp]   f32   fused bias
    # whh_ref  : [2Hp, 8Hp] bf16  block-diagonal recurrent weights
    # hcat_ref : [block_B, 2Hp] f32  output [h_n_left | h_n_right] (padded)
    # h_scr/c_scr : [block_B, 2Hp] f32 carried LSTM state (VMEM scratch)
    # xg_scr   : [chunk_L, block_B, 8Hp] f32 per-chunk input projections
    chunk_L, Bb, E2 = x_ref.shape
    H2 = whh_ref.shape[0]          # 2*Hp (fused state width)
    G = whh_ref.shape[1]           # 8*Hp (fused gate width)
    H6 = 3 * H2
    t_blk = pl.program_id(1)

    @pl.when(t_blk == 0)
    def _():
        h_scr[...] = jnp.zeros_like(h_scr)
        c_scr[...] = jnp.zeros_like(c_scr)

    # Input projection for all timesteps of this chunk: one MXU matmul,
    # bias folded in, f32 accumulation.  Only the h-dependent matmul stays
    # on the serial critical path below.
    xg_scr[...] = (
        jnp.dot(x_ref[...].reshape(chunk_L * Bb, E2), wih_ref[...],
                preferred_element_type=jnp.float32)
        + b_ref[...]
    ).reshape(chunk_L, Bb, G)

    lens = lens_ref[...]           # hoisted out of the loop
    whh = whh_ref[...]             # resident across the loop
    t0 = t_blk * chunk_L

    def step(i, carry):
        h, c = carry                                           # f32 [Bb, 2Hp]
        gates = xg_scr[i] + jnp.dot(h.astype(jnp.bfloat16), whh,
                                    preferred_element_type=jnp.float32)
        # gate layout [i | f | o | g]: sigmoid on leading 6H cols, tanh on rest
        sig = jax.nn.sigmoid(gates[:, :H6])
        i_g = sig[:, 0:H2]
        f_g = sig[:, H2:2 * H2]
        o_g = sig[:, 2 * H2:H6]
        g_g = jnp.tanh(gates[:, H6:])
        c_new = f_g * c + i_g * g_g
        h_new = o_g * jnp.tanh(c_new)
        # Freeze state past each sequence's true length (packed-LSTM h_n).
        valid = (t0 + i) < lens                                # [Bb, 2Hp]
        return jnp.where(valid, h_new, h), jnp.where(valid, c_new, c)

    h, c = lax.fori_loop(0, chunk_L, step, (h_scr[...], c_scr[...]),
                         unroll=min(chunk_L, 8))
    h_scr[...] = h
    c_scr[...] = c

    @pl.when(t_blk == pl.num_programs(1) - 1)
    def _():
        hcat_ref[...] = h_scr[...]


# torch gate column order is (i, f, g, o); fused layout puts the three
# sigmoid gates first and the tanh candidate gate last: (i, f, o, g).
_GATE_ORDER = (0, 1, 3, 2)


def _pad_rows(w, kp):
    k = w.shape[0]
    if k == kp:
        return w
    return jnp.concatenate([w, jnp.zeros((kp - k, w.shape[1]), w.dtype)], axis=0)


def _fuse_gate_blocks(wl, wr, hidden, hidden_pad):
    """[K1,4H],[K2,4H] (torch gate order i,f,g,o) -> block-diagonal
    [K1+K2, 8Hp] with fused gate layout [i_l,i_r | f_l,f_r | o_l,o_r | g_l,g_r],
    each gate half zero-padded from H to Hp columns."""
    k1, k2 = wl.shape[0], wr.shape[0]
    dt = wl.dtype
    cols = []
    for g in _GATE_ORDER:
        gl = jnp.zeros((k1, hidden_pad), dt).at[:, :hidden].set(
            wl[:, g * hidden:(g + 1) * hidden])
        gr = jnp.zeros((k2, hidden_pad), dt).at[:, :hidden].set(
            wr[:, g * hidden:(g + 1) * hidden])
        top = jnp.concatenate([gl, jnp.zeros((k1, hidden_pad), dt)], axis=1)
        bot = jnp.concatenate([jnp.zeros((k2, hidden_pad), dt), gr], axis=1)
        cols.append(jnp.concatenate([top, bot], axis=0))       # [K1+K2, 2Hp]
    return jnp.concatenate(cols, axis=1)                       # [K1+K2, 8Hp]


def prepare_params(embed, wih_l, whh_l, b_l, wih_r, whh_r, b_r, wd, bd):
    """One-time fusion of the two LSTMs' weights into padded block-diagonal
    form (gate order i,f,o,g; hidden width padded so 2*Hp % 128 == 0)."""
    H = whh_l.shape[0]
    Hp = ((H + 63) // 64) * 64                                  # 2*Hp % 128 == 0

    wih_blk = _fuse_gate_blocks(wih_l, wih_r, H, Hp).astype(jnp.bfloat16)   # [2E, 8Hp]
    whh_blk = _fuse_gate_blocks(_pad_rows(whh_l, Hp), _pad_rows(whh_r, Hp),
                                H, Hp).astype(jnp.bfloat16)                 # [2Hp, 8Hp]

    b_cols = []
    for g in _GATE_ORDER:
        bl = jnp.zeros((1, Hp), b_l.dtype).at[:, :H].set(b_l[:, g * H:(g + 1) * H])
        br = jnp.zeros((1, Hp), b_r.dtype).at[:, :H].set(b_r[:, g * H:(g + 1) * H])
        b_cols.append(jnp.concatenate([bl, br], axis=1))
    b_blk = jnp.concatenate(b_cols, axis=1)                                 # [1, 8Hp] f32

    # pad dense weight rows to the padded hidden layout [h_l(Hp) | h_r(Hp)]
    P = wd.shape[1]
    wd_pad = jnp.zeros((2 * Hp, P), wd.dtype)
    wd_pad = wd_pad.at[:H].set(wd[:H])
    wd_pad = wd_pad.at[Hp:Hp + H].set(wd[H:])

    return dict(embed=embed, wih_blk=wih_blk, whh_blk=whh_blk,
                b_blk=b_blk, wd=wd_pad, bd=bd)


@jax.jit
def td_lstm_forward(x_l_tok, x_r_tok, params):
    B, L = x_l_tok.shape
    embed = params["embed"]                      # [V, E]    f32
    wih_blk = params["wih_blk"]                  # [2E, 8Hp] bf16
    whh_blk = params["whh_blk"]                  # [2Hp,8Hp] bf16
    b_blk = params["b_blk"]                      # [1, 8Hp]  f32
    H2p = whh_blk.shape[0]                       # 2*Hp
    G = whh_blk.shape[1]                         # 8*Hp
    Hp = H2p // 2

    # --- glue: lengths, embedding gather, time-major layout ------------------
    # Note: zero-length (all-pad) rows return h=0 here; PyTorch's
    # pack_padded_sequence would reject them (documented behavioral difference).
    len_l = jnp.sum(x_l_tok != 0, axis=-1).astype(jnp.int32)            # [B]
    len_r = jnp.sum(x_r_tok != 0, axis=-1).astype(jnp.int32)            # [B]
    xl = embed[x_l_tok]                                                  # [B, L, E]
    xr = embed[x_r_tok]                                                  # [B, L, E]
    x_cat = jnp.concatenate([xl, xr], axis=-1).astype(jnp.bfloat16)      # [B, L, 2E]
    x_cat = jnp.transpose(x_cat, (1, 0, 2))                              # [L, B, 2E]
    E2 = x_cat.shape[-1]

    # per-state-column lengths (cols 0:Hp <- left, Hp:2Hp <- right)
    lens_cat = jnp.concatenate(
        [jnp.broadcast_to(len_l[:, None], (B, Hp)),
         jnp.broadcast_to(len_r[:, None], (B, Hp))], axis=-1)            # [B, 2Hp]

    # --- static tiling parameters --------------------------------------------
    chunk_L = 16 if L > 16 else max(1, L // 2)        # >=2 time chunks when L>1
    Lp = ((L + chunk_L - 1) // chunk_L) * chunk_L
    if Lp != L:
        # padded timesteps are frozen by the lens mask (t >= L >= lens)
        x_cat = jnp.concatenate(
            [x_cat, jnp.zeros((Lp - L, B, E2), x_cat.dtype)], axis=0)
    num_t = Lp // chunk_L
    # shard batch across both v7x TensorCores when block_B stays 8-aligned
    block_B = B // 2 if (B % 16 == 0) else B
    num_b = B // block_B

    grid_spec = pltpu.PrefetchScalarGridSpec(
        num_scalar_prefetch=0,
        grid=(num_b, num_t),
        in_specs=[
            pl.BlockSpec((chunk_L, block_B, E2), lambda b, t: (t, b, 0)),
            pl.BlockSpec((block_B, H2p), lambda b, t: (b, 0)),
            pl.BlockSpec((E2, G), lambda b, t: (0, 0)),
            pl.BlockSpec((1, G), lambda b, t: (0, 0)),
            pl.BlockSpec((H2p, G), lambda b, t: (0, 0)),
        ],
        out_specs=pl.BlockSpec((block_B, H2p), lambda b, t: (b, 0)),
        scratch_shapes=[
            pltpu.VMEM((block_B, H2p), jnp.float32),          # h carry
            pltpu.VMEM((block_B, H2p), jnp.float32),          # c carry
            pltpu.VMEM((chunk_L, block_B, G), jnp.float32),   # per-chunk xg
        ],
    )

    h_cat = pl.pallas_call(
        fused_dynamic_lstm_kernel,
        out_shape=jax.ShapeDtypeStruct((B, H2p), jnp.float32),
        grid_spec=grid_spec,
        compiler_params=pltpu.CompilerParams(
            dimension_semantics=("parallel", "arbitrary"),
            vmem_limit_bytes=32 * 1024 * 1024),
    )(x_cat, lens_cat, wih_blk, b_blk, whh_blk)                          # [B, 2Hp]

    # --- tiny final dense in the wrapper (P lanes, not worth a kernel) -------
    return jnp.dot(h_cat, params["wd"],
                   preferred_element_type=jnp.float32) + params["bd"]


def _ref_lstm_last_hidden(x, lens, wih_t, whh_t, b):
    # pure-JAX f32 reference of the masked LSTM recurrence (x: [B,L,E])
    B, L, E = x.shape
    H = whh_t.shape[0]
    h = jnp.zeros((B, H), jnp.float32)
    c = jnp.zeros((B, H), jnp.float32)
    for t in range(L):
        gates = x[:, t, :] @ wih_t + h @ whh_t + b
        i_g = jax.nn.sigmoid(gates[:, 0:H])
        f_g = jax.nn.sigmoid(gates[:, H:2 * H])
        g_g = jnp.tanh(gates[:, 2 * H:3 * H])
        o_g = jax.nn.sigmoid(gates[:, 3 * H:4 * H])
        c_new = f_g * c + i_g * g_g
        h_new = o_g * jnp.tanh(c_new)
        valid = (t < lens)
        h = jnp.where(valid, h_new, h)
        c = jnp.where(valid, c_new, c)
    return h


if __name__ == "__main__":
    B, L, V, E, H, P = 8, 8, 50, 32, 32, 3

    key = jax.random.PRNGKey(0)
    ks = jax.random.split(key, 12)

    # Deterministic synthetic "pretrained" embedding matrix (row 0 = pad).
    embed = jax.random.normal(ks[0], (V, E), jnp.float32) * 0.1
    embed = embed.at[0].set(0.0)

    def lstm_params(k):
        k1, k2, k3, k4 = jax.random.split(k, 4)
        w_ih = jax.random.normal(k1, (4 * H, E), jnp.float32) * 0.1   # torch layout
        w_hh = jax.random.normal(k2, (4 * H, H), jnp.float32) * 0.1
        b_ih = jax.random.normal(k3, (4 * H,), jnp.float32) * 0.1
        b_hh = jax.random.normal(k4, (4 * H,), jnp.float32) * 0.1
        return w_ih.T, w_hh.T, (b_ih + b_hh)[None, :]

    wih_l, whh_l, b_l = lstm_params(ks[1])
    wih_r, whh_r, b_r = lstm_params(ks[2])
    wd = (jax.random.normal(ks[3], (P, 2 * H), jnp.float32) * 0.1).T   # [2H, P]
    bd = (jax.random.normal(ks[4], (P,), jnp.float32) * 0.1)[None, :]  # [1, P]

    params = prepare_params(embed, wih_l, whh_l, b_l, wih_r, whh_r, b_r, wd, bd)

    # Token sequences with zero padding (variable lengths per batch element).
    lens_l = jnp.array([5, 8, 3, 6, 1, 7, 4, 8], jnp.int32)
    lens_r = jnp.array([8, 2, 6, 4, 7, 3, 5, 1], jnp.int32)
    pos = jnp.arange(L)[None, :]
    x_l_tok = jnp.where(pos < lens_l[:, None],
                        jax.random.randint(ks[5], (B, L), 1, V), 0).astype(jnp.int32)
    x_r_tok = jnp.where(pos < lens_r[:, None],
                        jax.random.randint(ks[6], (B, L), 1, V), 0).astype(jnp.int32)

    out = td_lstm_forward(x_l_tok, x_r_tok, params)
    out = jax.block_until_ready(out)
    assert out.shape == (B, P)

    # correctness check vs pure-f32 JAX reference (bf16 MXU operands inside the
    # fused path introduce small drift -> relaxed tolerance).
    ll = jnp.sum(x_l_tok != 0, axis=-1)[:, None]
    lr = jnp.sum(x_r_tok != 0, axis=-1)[:, None]
    h_l = _ref_lstm_last_hidden(embed[x_l_tok], ll, wih_l, whh_l, b_l)
    h_r = _ref_lstm_last_hidden(embed[x_r_tok], lr, wih_r, whh_r, b_r)
    ref = jnp.concatenate([h_l, h_r], axis=-1) @ wd + bd
    assert jnp.allclose(out, ref, atol=1e-2, rtol=1e-2), "mismatch vs reference"

    print("KERNEL_OK")
</pallas_src>

<mosaic_0001>
module attributes {stable_mosaic.version = 11 : i64} {
  func.func @fused_dynamic_lstm_kernel(%arg0: i32, %arg1: i32, %arg2: memref<4x8x64xbf16, #tpu.memory_space<vmem>>, %arg3: memref<8x128xi32, #tpu.memory_space<vmem>>, %arg4: memref<64x512xbf16, #tpu.memory_space<vmem>>, %arg5: memref<1x512xf32, #tpu.memory_space<vmem>>, %arg6: memref<128x512xbf16, #tpu.memory_space<vmem>>, %arg7: memref<8x128xf32, #tpu.memory_space<vmem>>, %arg8: memref<8x128xf32, #tpu.memory_space<vmem>>, %arg9: memref<8x128xf32, #tpu.memory_space<vmem>>, %arg10: memref<4x8x512xf32, #tpu.memory_space<vmem>>) attributes {dimension_semantics = [#tpu.dimension_semantics<parallel>, #tpu.dimension_semantics<arbitrary>], iteration_bounds = array<i64: 1, 2>, scalar_prefetch = 0 : i64, scratch_operands = 3 : i64, tpu.core_type = #tpu.core_type<tc>, window_params = [{transform_indices = @transform_0, window_bounds = array<i64: 4, 8, 64>}, {transform_indices = @transform_1, window_bounds = array<i64: 8, 128>}, {pipeline_mode = #tpu.pipeline_mode<synchronous>, transform_indices = @transform_2, window_bounds = array<i64: 64, 512>}, {pipeline_mode = #tpu.pipeline_mode<synchronous>, transform_indices = @transform_3, window_bounds = array<i64: 1, 512>}, {pipeline_mode = #tpu.pipeline_mode<synchronous>, transform_indices = @transform_4, window_bounds = array<i64: 128, 512>}, {transform_indices = @transform_5, window_bounds = array<i64: 8, 128>}]} {
    %c0_i32 = arith.constant 0 : i32
    %0 = arith.cmpi eq, %arg1, %c0_i32 : i32
    %1 = arith.extui %0 : i1 to i32
    %c0_i32_0 = arith.constant 0 : i32
    %2 = arith.cmpi ne, %1, %c0_i32_0 : i32
    scf.if %2 {
      %cst_42 = arith.constant 0.000000e+00 : f32
      %130 = vector.broadcast %cst_42 : f32 to vector<8x128xf32>
      %c0_43 = arith.constant 0 : index
      %c0_44 = arith.constant 0 : index
      %131 = vector.load %arg8[%c0_43, %c0_44] : memref<8x128xf32, #tpu.memory_space<vmem>>, vector<8x128xf32>
      tpu.vector_store %arg8[%c0_43, %c0_44], %130 {strides = array<i32>} : memref<8x128xf32, #tpu.memory_space<vmem>>, vector<8x128xf32>,
      %cst_45 = arith.constant 0.000000e+00 : f32
      %132 = vector.broadcast %cst_45 : f32 to vector<8x128xf32>
      %c0_46 = arith.constant 0 : index
      %c0_47 = arith.constant 0 : index
      %133 = vector.load %arg9[%c0_46, %c0_47] : memref<8x128xf32, #tpu.memory_space<vmem>>, vector<8x128xf32>
      tpu.vector_store %arg9[%c0_46, %c0_47], %132 {strides = array<i32>} : memref<8x128xf32, #tpu.memory_space<vmem>>, vector<8x128xf32>,
    } else {
    }
    %c0 = arith.constant 0 : index
    %c0_1 = arith.constant 0 : index
    %c0_2 = arith.constant 0 : index
    %3 = vector.load %arg2[%c0, %c0_1, %c0_2] : memref<4x8x64xbf16, #tpu.memory_space<vmem>>, vector<4x8x64xbf16>
    %4 = vector.shape_cast %3 : vector<4x8x64xbf16> to vector<32x64xbf16>
    %c0_3 = arith.constant 0 : index
    %c0_4 = arith.constant 0 : index
    %5 = vector.load %arg4[%c0_3, %c0_4] : memref<64x512xbf16, #tpu.memory_space<vmem>>, vector<64x512xbf16>
    %cst = arith.constant dense<0.000000e+00> : vector<32x512xf32>
    %6 = tpu.matmul %4, %5, %cst {dimension_numbers = #tpu.dot_dimension_numbers<[1], [0], [0], [1], [0, 0, 1, 1], [], []>} : vector<32x64xbf16>, vector<64x512xbf16>, vector<32x512xf32> -> vector<32x512xf32>
    %c0_5 = arith.constant 0 : index
    %c0_6 = arith.constant 0 : index
    %7 = vector.load %arg5[%c0_5, %c0_6] : memref<1x512xf32, #tpu.memory_space<vmem>>, vector<1x512xf32>
    %8 = vector.broadcast %7 : vector<1x512xf32> to vector<32x512xf32>
    %9 = arith.addf %6, %8 : vector<32x512xf32>
    %10 = vector.shape_cast %9 : vector<32x512xf32> to vector<4x8x512xf32>
    %c0_7 = arith.constant 0 : index
    %c0_8 = arith.constant 0 : index
    %c0_9 = arith.constant 0 : index
    %11 = vector.load %arg10[%c0_7, %c0_8, %c0_9] : memref<4x8x512xf32, #tpu.memory_space<vmem>>, vector<4x8x512xf32>
    tpu.vector_store %arg10[%c0_7, %c0_8, %c0_9], %10 {strides = array<i32>} : memref<4x8x512xf32, #tpu.memory_space<vmem>>, vector<4x8x512xf32>,
    %c0_10 = arith.constant 0 : index
    %c0_11 = arith.constant 0 : index
    %12 = vector.load %arg3[%c0_10, %c0_11] : memref<8x128xi32, #tpu.memory_space<vmem>>, vector<8x128xi32>
    %c0_12 = arith.constant 0 : index
    %c0_13 = arith.constant 0 : index
    %13 = vector.load %arg6[%c0_12, %c0_13] : memref<128x512xbf16, #tpu.memory_space<vmem>>, vector<128x512xbf16>
    %c4_i32 = arith.constant 4 : i32
    %14 = arith.muli %arg1, %c4_i32 : i32
    %c0_14 = arith.constant 0 : index
    %c0_15 = arith.constant 0 : index
    %15 = vector.load %arg8[%c0_14, %c0_15] : memref<8x128xf32, #tpu.memory_space<vmem>>, vector<8x128xf32>
    %c0_16 = arith.constant 0 : index
    %c0_17 = arith.constant 0 : index
    %16 = vector.load %arg9[%c0_16, %c0_17] : memref<8x128xf32, #tpu.memory_space<vmem>>, vector<8x128xf32>
    %c0_i32_18 = arith.constant 0 : i32
    %17 = arith.index_cast %c0_i32_18 : i32 to index
    %c0_19 = arith.constant 0 : index
    %c0_20 = arith.constant 0 : index
    %18 = vector.load %arg10[%17, %c0_19, %c0_20] : memref<4x8x512xf32, #tpu.memory_space<vmem>>, vector<1x8x512xf32>
    %19 = vector.shape_cast %18 : vector<1x8x512xf32> to vector<8x512xf32>
    %20 = arith.truncf %15 : vector<8x128xf32> to vector<8x128xbf16>
    %cst_21 = arith.constant dense<0.000000e+00> : vector<8x512xf32>
    %21 = tpu.matmul %20, %13, %cst_21 {dimension_numbers = #tpu.dot_dimension_numbers<[1], [0], [0], [1], [0, 0, 1, 1], [], []>} : vector<8x128xbf16>, vector<128x512xbf16>, vector<8x512xf32> -> vector<8x512xf32>
    %22 = arith.addf %19, %21 : vector<8x512xf32>
    %23 = vector.extract_strided_slice %22 {offsets = [0, 0], sizes = [8, 384], strides = [1, 1]} : vector<8x512xf32> to vector<8x384xf32>
    %24 = arith.negf %23 : vector<8x384xf32>
    %25 = math.exp %24 : vector<8x384xf32>
    %cst_22 = arith.constant 1.000000e+00 : f32
    %26 = vector.broadcast %cst_22 : f32 to vector<8x384xf32>
    %27 = arith.addf %26, %25 : vector<8x384xf32>
    %28 = arith.divf %26, %27 : vector<8x384xf32>
    %29 = vector.extract_strided_slice %28 {offsets = [0, 0], sizes = [8, 128], strides = [1, 1]} : vector<8x384xf32> to vector<8x128xf32>
    %30 = vector.extract_strided_slice %28 {offsets = [0, 128], sizes = [8, 128], strides = [1, 1]} : vector<8x384xf32> to vector<8x128xf32>
    %31 = vector.extract_strided_slice %28 {offsets = [0, 256], sizes = [8, 128], strides = [1, 1]} : vector<8x384xf32> to vector<8x128xf32>
    %32 = vector.extract_strided_slice %22 {offsets = [0, 384], sizes = [8, 128], strides = [1, 1]} : vector<8x512xf32> to vector<8x128xf32>
    %33 = math.tanh %32 : vector<8x128xf32>
    %34 = arith.mulf %30, %16 : vector<8x128xf32>
    %35 = arith.mulf %29, %33 : vector<8x128xf32>
    %36 = arith.addf %34, %35 : vector<8x128xf32>
    %37 = math.tanh %36 : vector<8x128xf32>
    %38 = arith.mulf %31, %37 : vector<8x128xf32>
    %39 = arith.addi %14, %c0_i32_18 : i32
    %40 = vector.broadcast %39 : i32 to vector<8x128xi32>
    %41 = arith.cmpi slt, %40, %12 : vector<8x128xi32>
    %42 = arith.select %41, %38, %15 : vector<8x128xi1>, vector<8x128xf32>
    %43 = arith.select %41, %36, %16 : vector<8x128xi1>, vector<8x128xf32>
    %c1_i32 = arith.constant 1 : i32
    %44 = arith.index_cast %c1_i32 : i32 to index
    %c0_23 = arith.constant 0 : index
    %c0_24 = arith.constant 0 : index
    %45 = vector.load %arg10[%44, %c0_23, %c0_24] : memref<4x8x512xf32, #tpu.memory_space<vmem>>, vector<1x8x512xf32>
    %46 = vector.shape_cast %45 : vector<1x8x512xf32> to vector<8x512xf32>
    %47 = arith.truncf %42 : vector<8x128xf32> to vector<8x128xbf16>
    %cst_25 = arith.constant dense<0.000000e+00> : vector<8x512xf32>
    %48 = tpu.matmul %47, %13, %cst_25 {dimension_numbers = #tpu.dot_dimension_numbers<[1], [0], [0], [1], [0, 0, 1, 1], [], []>} : vector<8x128xbf16>, vector<128x512xbf16>, vector<8x512xf32> -> vector<8x512xf32>
    %49 = arith.addf %46, %48 : vector<8x512xf32>
    %50 = vector.extract_strided_slice %49 {offsets = [0, 0], sizes = [8, 384], strides = [1, 1]} : vector<8x512xf32> to vector<8x384xf32>
    %51 = arith.negf %50 : vector<8x384xf32>
    %52 = math.exp %51 : vector<8x384xf32>
    %cst_26 = arith.constant 1.000000e+00 : f32
    %53 = vector.broadcast %cst_26 : f32 to vector<8x384xf32>
    %54 = arith.addf %53, %52 : vector<8x384xf32>
    %55 = arith.divf %53, %54 : vector<8x384xf32>
    %56 = vector.extract_strided_slice %55 {offsets = [0, 0], sizes = [8, 128], strides = [1, 1]} : vector<8x384xf32> to vector<8x128xf32>
    %57 = vector.extract_strided_slice %55 {offsets = [0, 128], sizes = [8, 128], strides = [1, 1]} : vector<8x384xf32> to vector<8x128xf32>
    %58 = vector.extract_strided_slice %55 {offsets = [0, 256], sizes = [8, 128], strides = [1, 1]} : vector<8x384xf32> to vector<8x128xf32>
    %59 = vector.extract_strided_slice %49 {offsets = [0, 384], sizes = [8, 128], strides = [1, 1]} : vector<8x512xf32> to vector<8x128xf32>
    %60 = math.tanh %59 : vector<8x128xf32>
    %61 = arith.mulf %57, %43 : vector<8x128xf32>
    %62 = arith.mulf %56, %60 : vector<8x128xf32>
    %63 = arith.addf %61, %62 : vector<8x128xf32>
    %64 = math.tanh %63 : vector<8x128xf32>
    %65 = arith.mulf %58, %64 : vector<8x128xf32>
    %66 = arith.addi %14, %c1_i32 : i32
    %67 = vector.broadcast %66 : i32 to vector<8x128xi32>
    %68 = arith.cmpi slt, %67, %12 : vector<8x128xi32>
    %69 = arith.select %68, %65, %42 : vector<8x128xi1>, vector<8x128xf32>
    %70 = arith.select %68, %63, %43 : vector<8x128xi1>, vector<8x128xf32>
    %c2_i32 = arith.constant 2 : i32
    %71 = arith.index_cast %c2_i32 : i32 to index
    %c0_27 = arith.constant 0 : index
    %c0_28 = arith.constant 0 : index
    %72 = vector.load %arg10[%71, %c0_27, %c0_28] : memref<4x8x512xf32, #tpu.memory_space<vmem>>, vector<1x8x512xf32>
    %73 = vector.shape_cast %72 : vector<1x8x512xf32> to vector<8x512xf32>
    %74 = arith.truncf %69 : vector<8x128xf32> to vector<8x128xbf16>
    %cst_29 = arith.constant dense<0.000000e+00> : vector<8x512xf32>
    %75 = tpu.matmul %74, %13, %cst_29 {dimension_numbers = #tpu.dot_dimension_numbers<[1], [0], [0], [1], [0, 0, 1, 1], [], []>} : vector<8x128xbf16>, vector<128x512xbf16>, vector<8x512xf32> -> vector<8x512xf32>
    %76 = arith.addf %73, %75 : vector<8x512xf32>
    %77 = vector.extract_strided_slice %76 {offsets = [0, 0], sizes = [8, 384], strides = [1, 1]} : vector<8x512xf32> to vector<8x384xf32>
    %78 = arith.negf %77 : vector<8x384xf32>
    %79 = math.exp %78 : vector<8x384xf32>
    %cst_30 = arith.constant 1.000000e+00 : f32
    %80 = vector.broadcast %cst_30 : f32 to vector<8x384xf32>
    %81 = arith.addf %80, %79 : vector<8x384xf32>
    %82 = arith.divf %80, %81 : vector<8x384xf32>
    %83 = vector.extract_strided_slice %82 {offsets = [0, 0], sizes = [8, 128], strides = [1, 1]} : vector<8x384xf32> to vector<8x128xf32>
    %84 = vector.extract_strided_slice %82 {offsets = [0, 128], sizes = [8, 128], strides = [1, 1]} : vector<8x384xf32> to vector<8x128xf32>
    %85 = vector.extract_strided_slice %82 {offsets = [0, 256], sizes = [8, 128], strides = [1, 1]} : vector<8x384xf32> to vector<8x128xf32>
    %86 = vector.extract_strided_slice %76 {offsets = [0, 384], sizes = [8, 128], strides = [1, 1]} : vector<8x512xf32> to vector<8x128xf32>
    %87 = math.tanh %86 : vector<8x128xf32>
    %88 = arith.mulf %84, %70 : vector<8x128xf32>
    %89 = arith.mulf %83, %87 : vector<8x128xf32>
    %90 = arith.addf %88, %89 : vector<8x128xf32>
    %91 = math.tanh %90 : vector<8x128xf32>
    %92 = arith.mulf %85, %91 : vector<8x128xf32>
    %93 = arith.addi %14, %c2_i32 : i32
    %94 = vector.broadcast %93 : i32 to vector<8x128xi32>
    %95 = arith.cmpi slt, %94, %12 : vector<8x128xi32>
    %96 = arith.select %95, %92, %69 : vector<8x128xi1>, vector<8x128xf32>
    %97 = arith.select %95, %90, %70 : vector<8x128xi1>, vector<8x128xf32>
    %c3_i32 = arith.constant 3 : i32
    %98 = arith.index_cast %c3_i32 : i32 to index
    %c0_31 = arith.constant 0 : index
    %c0_32 = arith.constant 0 : index
    %99 = vector.load %arg10[%98, %c0_31, %c0_32] : memref<4x8x512xf32, #tpu.memory_space<vmem>>, vector<1x8x512xf32>
    %100 = vector.shape_cast %99 : vector<1x8x512xf32> to vector<8x512xf32>
    %101 = arith.truncf %96 : vector<8x128xf32> to vector<8x128xbf16>
    %cst_33 = arith.constant dense<0.000000e+00> : vector<8x512xf32>
    %102 = tpu.matmul %101, %13, %cst_33 {dimension_numbers = #tpu.dot_dimension_numbers<[1], [0], [0], [1], [0, 0, 1, 1], [], []>} : vector<8x128xbf16>, vector<128x512xbf16>, vector<8x512xf32> -> vector<8x512xf32>
    %103 = arith.addf %100, %102 : vector<8x512xf32>
    %104 = vector.extract_strided_slice %103 {offsets = [0, 0], sizes = [8, 384], strides = [1, 1]} : vector<8x512xf32> to vector<8x384xf32>
    %105 = arith.negf %104 : vector<8x384xf32>
    %106 = math.exp %105 : vector<8x384xf32>
    %cst_34 = arith.constant 1.000000e+00 : f32
    %107 = vector.broadcast %cst_34 : f32 to vector<8x384xf32>
    %108 = arith.addf %107, %106 : vector<8x384xf32>
    %109 = arith.divf %107, %108 : vector<8x384xf32>
    %110 = vector.extract_strided_slice %109 {offsets = [0, 0], sizes = [8, 128], strides = [1, 1]} : vector<8x384xf32> to vector<8x128xf32>
    %111 = vector.extract_strided_slice %109 {offsets = [0, 128], sizes = [8, 128], strides = [1, 1]} : vector<8x384xf32> to vector<8x128xf32>
    %112 = vector.extract_strided_slice %109 {offsets = [0, 256], sizes = [8, 128], strides = [1, 1]} : vector<8x384xf32> to vector<8x128xf32>
    %113 = vector.extract_strided_slice %103 {offsets = [0, 384], sizes = [8, 128], strides = [1, 1]} : vector<8x512xf32> to vector<8x128xf32>
    %114 = math.tanh %113 : vector<8x128xf32>
    %115 = arith.mulf %111, %97 : vector<8x128xf32>
    %116 = arith.mulf %110, %114 : vector<8x128xf32>
    %117 = arith.addf %115, %116 : vector<8x128xf32>
    %118 = math.tanh %117 : vector<8x128xf32>
    %119 = arith.mulf %112, %118 : vector<8x128xf32>
    %120 = arith.addi %14, %c3_i32 : i32
    %121 = vector.broadcast %120 : i32 to vector<8x128xi32>
    %122 = arith.cmpi slt, %121, %12 : vector<8x128xi32>
    %123 = arith.select %122, %119, %96 : vector<8x128xi1>, vector<8x128xf32>
    %124 = arith.select %122, %117, %97 : vector<8x128xi1>, vector<8x128xf32>
    %c4_i32_35 = arith.constant 4 : i32
    %c0_36 = arith.constant 0 : index
    %c0_37 = arith.constant 0 : index
    %125 = vector.load %arg8[%c0_36, %c0_37] : memref<8x128xf32, #tpu.memory_space<vmem>>, vector<8x128xf32>
    tpu.vector_store %arg8[%c0_36, %c0_37], %123 {strides = array<i32>} : memref<8x128xf32, #tpu.memory_space<vmem>>, vector<8x128xf32>,
    %c0_38 = arith.constant 0 : index
    %c0_39 = arith.constant 0 : index
    %126 = vector.load %arg9[%c0_38, %c0_39] : memref<8x128xf32, #tpu.memory_space<vmem>>, vector<8x128xf32>
    tpu.vector_store %arg9[%c0_38, %c0_39], %124 {strides = array<i32>} : memref<8x128xf32, #tpu.memory_space<vmem>>, vector<8x128xf32>,
    %c1_i32_40 = arith.constant 1 : i32
    %127 = arith.cmpi eq, %arg1, %c1_i32_40 : i32
    %128 = arith.extui %127 : i1 to i32
    %c0_i32_41 = arith.constant 0 : i32
    %129 = arith.cmpi ne, %128, %c0_i32_41 : i32
    scf.if %129 {
      %c0_42 = arith.constant 0 : index
      %c0_43 = arith.constant 0 : index
      %130 = vector.load %arg8[%c0_42, %c0_43] : memref<8x128xf32, #tpu.memory_space<vmem>>, vector<8x128xf32>
      %c0_44 = arith.constant 0 : index
      %c0_45 = arith.constant 0 : index
      %131 = vector.load %arg7[%c0_44, %c0_45] : memref<8x128xf32, #tpu.memory_space<vmem>>, vector<8x128xf32>
      tpu.vector_store %arg7[%c0_44, %c0_45], %130 {strides = array<i32>} : memref<8x128xf32, #tpu.memory_space<vmem>>, vector<8x128xf32>,
    } else {
    }
    return
  }
  func.func @transform_0(%arg0: i32, %arg1: i32) -> (i32, i32, i32) {
    %c0_i32 = arith.constant 0 : i32
    %c0_i32_0 = arith.constant 0 : i32
    return %arg1, %arg0, %c0_i32 : i32, i32, i32
  }
  func.func @transform_1(%arg0: i32, %arg1: i32) -> (i32, i32) {
    %c0_i32 = arith.constant 0 : i32
    %c0_i32_0 = arith.constant 0 : i32
    return %arg0, %c0_i32 : i32, i32
  }
  func.func @transform_2(%arg0: i32, %arg1: i32) -> (i32, i32) {
    %c0_i32 = arith.constant 0 : i32
    %c0_i32_0 = arith.constant 0 : i32
    %c0_i32_1 = arith.constant 0 : i32
    return %c0_i32, %c0_i32_0 : i32, i32
  }
  func.func @transform_3(%arg0: i32, %arg1: i32) -> (i32, i32) {
    %c0_i32 = arith.constant 0 : i32
    %c0_i32_0 = arith.constant 0 : i32
    %c0_i32_1 = arith.constant 0 : i32
    return %c0_i32, %c0_i32_0 : i32, i32
  }
  func.func @transform_4(%arg0: i32, %arg1: i32) -> (i32, i32) {
    %c0_i32 = arith.constant 0 : i32
    %c0_i32_0 = arith.constant 0 : i32
    %c0_i32_1 = arith.constant 0 : i32
    return %c0_i32, %c0_i32_0 : i32, i32
  }
  func.func @transform_5(%arg0: i32, %arg1: i32) -> (i32, i32) {
    %c0_i32 = arith.constant 0 : i32
    %c0_i32_0 = arith.constant 0 : i32
    return %arg0, %c0_i32 : i32, i32
  }
}

</mosaic_0001>

<bundles_post_ra>
// kernel: td_lstm_forward.1
= control target key start
LH: loop header
LB: loop body
LE: loop exit
PB: predicated region body
PF: predicated region fallthrough
CT: control target
= control target key end

     0   :  { %s1595_s18 = smov 0   ;;  %s1597_s19 = smov 0   ;;  %s2068_s0 = inlined_call_operand.vmem [shape: bf16[8,8,64], index: 0, kind: input, shape index: {}]   ;;  %s2069_s1 = inlined_call_operand.vmem [shape: s32[8,128], index: 1, kind: input, shape index: {}]   ;;  %s2070_s2 = inlined_call_operand.vmem [shape: bf16[64,512], index: 2, kind: input, shape index: {}]   ;;  %s2071_s3 = inlined_call_operand.vmem [shape: f32[1,512], index: 3, kind: input, shape index: {}]   ;;  %s2072_s4 = inlined_call_operand.vmem [shape: bf16[128,512], index: 4, kind: input, shape index: {}]   ;;  %s2073_s5 = inlined_call_operand.vmem [shape: f32[8,128], index: 5, kind: output, shape index: {}]  }
   0x1   :  { %s1599_s20 = smov 0  }
   0x2 LB: > { %s24_s21 = sadd.s32 1, %s1557_s19  ;;  %p1300_p0 = scmp.ge.s32.totalorder %s1561_s20, 1  ;;  %s1561_s20 = sphi %s1599_s20, %s15_s20   ;;  %s1557_s19 = sphi %s1597_s19, %s2094_s19   ;;  %s1553_s18 = sphi %s1595_s18, %s2093_s18  }
   0x3   : > { %p25_p1 = scmp.ge.s32.totalorder %s24_s21, 2  ;;  %p214_p2 = scmp.lt.s32.totalorder %s1561_s20, 3 }
   0x5   : > { %s2096_s21 = smov (%p25_p1, %s24_s21), 0  ;;  %p215_p3 = pnand %p1300_p0, %p214_p2 }
   0x7   : > { %218 = sbr.rel (%p215_p3) target bundleno = 1124 (0x464), region = 40 }
   0xe   : > { %s1616_s22 = sshll.u32 %s1553_s18, 2  ;;  %p1303_p5 = scmp.ne.s32.totalorder %s1553_s18, 0 }
   0xf   : > { %p249_p4 = scmp.lt.s32.totalorder %s1616_s22, 7  ;;  %v1563_v0 = vmov (!%p1303_p5), 0.0  }
  0x10   : > { %269 = sbr.rel (%p1303_p5) target bundleno = 23 (0x17), region = 44  ;;  %270 = vst [vmem:[#allocation2] sm:$0xff] (!%p1303_p5), %v1563_v0  ;;  %271 = vst [vmem:[#allocation3] sm:$0xff] (!%p1303_p5), %v1563_v0 }
  0x11   : > { %s250_s23 = scalar_select %p249_p4, %s1616_s22, 7 }
  0x13   : > { %s1302_s24 = sshll.u32 %s250_s23, 2 }
  0x14   : > { %s1623_s27 = scalar_lea.vmem %s2068_s0, %s1302_s24 }
  0x17 PF: > { %v1401_v1 = vld [vmem:[%s2070_s2 + $0x4] ss:$16 sps:$4 sm:$0xff]   ;;  %v1403_v2 = vld [vmem:[%s2070_s2 + $0xc] ss:$16 sps:$4 sm:$0xff]   ;;  %v2074_v3 = vmov 0   ;;  %vm404_vm0 = vcmask 523264   ;;  %v294_v54 = vlaneseq }
  0x18   : > { %443 = vmatprep.mubr.bf16.mxu0 %v2074_v3  ;;  %496 = vmatprep.mubr.bf16.mxu1 %v2074_v3  ;;  %v1405_v4 = vld [vmem:[%s2070_s2] ss:$16 sps:$4 sm:$0xff]   ;;  %v1406_v5 = vld [vmem:[%s2070_s2 + $0x8] ss:$16 sps:$4 sm:$0xff]   ;;  %v1407_v6 = vld [vmem:[%s2070_s2 + $0x24] ss:$16 sps:$4 sm:$0xff]  }
  0x19   : > { %411 = vmatprep.subr.bf16.mxu0 %v1401_v1  ;;  %464 = vmatprep.subr.bf16.mxu1 %v1403_v2  ;;  %v1409_v7 = vld [vmem:[%s2070_s2 + $0x2c] ss:$16 sps:$4 sm:$0xff]   ;;  %v1411_v8 = vld [vmem:[%s2070_s2 + $0x20] ss:$16 sps:$4 sm:$0xff]   ;;  %v1412_v9 = vld [vmem:[%s2070_s2 + $0x28] ss:$16 sps:$4 sm:$0xff]  }
  0x1a   : > { %412 = vmatpush1.bf16.msra.mxu0 %v1405_v4  ;;  %465 = vmatpush1.bf16.msra.mxu1 %v1406_v5  ;;  %v1413_v10 = vld [vmem:[%s2070_s2 + $0x44] ss:$16 sps:$4 sm:$0xff]   ;;  %v1415_v11 = vld [vmem:[%s2070_s2 + $0x4c] ss:$16 sps:$4 sm:$0xff]   ;;  %v1417_v12 = vld [vmem:[%s2070_s2 + $0x40] ss:$16 sps:$4 sm:$0xff]  }
  0x1b   : > { %413 = vmatprep.subr.bf16.mxu0 %v1407_v6  ;;  %466 = vmatprep.subr.bf16.mxu1 %v1409_v7  ;;  %v1418_v13 = vld [vmem:[%s2070_s2 + $0x48] ss:$16 sps:$4 sm:$0xff]   ;;  %v1419_v14 = vld [vmem:[%s2070_s2 + $0x64] ss:$16 sps:$4 sm:$0xff]   ;;  %v1421_v15 = vld [vmem:[%s2070_s2 + $0x6c] ss:$16 sps:$4 sm:$0xff]  }
  0x1c   : > { %v1423_v16 = vld [vmem:[%s2070_s2 + $0x60] ss:$16 sps:$4 sm:$0xff]   ;;  %v1424_v17 = vld [vmem:[%s2070_s2 + $0x68] ss:$16 sps:$4 sm:$0xff]   ;;  %v1679_v18 = vld [vmem:[%s2072_s4 + $0x4] ss:$16 sps:$4 sm:$0xff]  }
  0x1d   : > { %v1684_v19 = vld [vmem:[%s2072_s4 + $0xc] ss:$16 sps:$4 sm:$0xff]   ;;  %v1425_v20 = vld [vmem:[%s1623_s27] sm:$0xff]   ;;  %v1695_v22 = vld [vmem:[%s2072_s4 + $0x8] ss:$16 sps:$4 sm:$0xff]   ;;  %v295_v55 = vshrl.u32 %v294_v54, 7 }
  0x1e   : > { %414 = vmatpush1.bf16.msra.mxu0 %v1411_v8  ;;  %467 = vmatpush1.bf16.msra.mxu1 %v1412_v9  ;;  %v1690_v21 = vld [vmem:[%s2072_s4] ss:$16 sps:$4 sm:$0xff]   ;;  %v1700_v23 = vld [vmem:[%s2072_s4 + $0x24] ss:$16 sps:$4 sm:$0xff]   ;;  %v1707_v24 = vld [vmem:[%s2072_s4 + $0x2c] ss:$16 sps:$4 sm:$0xff]  }
  0x1f   : > { %415 = vmatprep.subr.bf16.mxu0 %v1413_v10  ;;  %468 = vmatprep.subr.bf16.mxu1 %v1415_v11  ;;  %v1714_v25 = vld [vmem:[%s2072_s4 + $0x20] ss:$16 sps:$4 sm:$0xff]   ;;  %v1721_v26 = vld [vmem:[%s2072_s4 + $0x28] ss:$16 sps:$4 sm:$0xff]   ;;  %v1728_v27 = vld [vmem:[%s2072_s4 + $0x44] ss:$16 sps:$4 sm:$0xff]  }
  0x20   : > { %v1733_v28 = vld [vmem:[%s2072_s4 + $0x4c] ss:$16 sps:$4 sm:$0xff]   ;;  %v1742_v29 = vld [vmem:[%s2072_s4 + $0x40] ss:$16 sps:$4 sm:$0xff]   ;;  %v1747_v30 = vld [vmem:[%s2072_s4 + $0x48] ss:$16 sps:$4 sm:$0xff]  }
  0x21   : > { %v1752_v31 = vld [vmem:[%s2072_s4 + $0x64] ss:$16 sps:$4 sm:$0xff]   ;;  %v1759_v32 = vld [vmem:[%s2072_s4 + $0x6c] ss:$16 sps:$4 sm:$0xff]   ;;  %v1764_v33 = vld [vmem:[%s2072_s4 + $0x60] ss:$16 sps:$4 sm:$0xff]  }
  0x22   : > { %416 = vmatpush1.bf16.msra.mxu0 %v1417_v12  ;;  %469 = vmatpush1.bf16.msra.mxu1 %v1418_v13  ;;  %v1460_v34 = vld [vmem:[%s1623_s27 + $0x8] sm:$0xff]   ;;  %v1777_v36 = vld [vmem:[%s2072_s4 + $0x84] ss:$16 sps:$4 sm:$0xff]   ;;  %v1791_v38 = vld [vmem:[%s2072_s4 + $0x80] ss:$16 sps:$4 sm:$0xff]   ;;  %v296_v56 = vsub.s32 0, %v295_v55 }
  0x23   : > { %417 = vmatprep.subr.bf16.mxu0 %v1419_v14  ;;  %470 = vmatprep.subr.bf16.mxu1 %v1421_v15  ;;  %v1772_v35 = vld [vmem:[%s2072_s4 + $0x68] ss:$16 sps:$4 sm:$0xff]   ;;  %v1784_v37 = vld [vmem:[%s2072_s4 + $0x8c] ss:$16 sps:$4 sm:$0xff]   ;;  %v1807_v40 = vld [vmem:[%s2072_s4 + $0xa4] ss:$16 sps:$4 sm:$0xff]  }
  0x24   : > { %v1800_v39 = vld [vmem:[%s2072_s4 + $0x88] ss:$16 sps:$4 sm:$0xff]   ;;  %v1812_v41 = vld [vmem:[%s2072_s4 + $0xac] ss:$16 sps:$4 sm:$0xff]   ;;  %v1819_v42 = vld [vmem:[%s2072_s4 + $0xa0] ss:$16 sps:$4 sm:$0xff]  }
  0x25   : > { %v1824_v43 = vld [vmem:[%s2072_s4 + $0xa8] ss:$16 sps:$4 sm:$0xff]   ;;  %v1831_v44 = vld [vmem:[%s2072_s4 + $0xc4] ss:$16 sps:$4 sm:$0xff]   ;;  %v1836_v45 = vld [vmem:[%s2072_s4 + $0xcc] ss:$16 sps:$4 sm:$0xff]  }
  0x26   : > { %418 = vmatpush1.bf16.msra.mxu0 %v1423_v16  ;;  %471 = vmatpush1.bf16.msra.mxu1 %v1424_v17  ;;  %v1843_v46 = vld [vmem:[%s2072_s4 + $0xc0] ss:$16 sps:$4 sm:$0xff]   ;;  %v1848_v47 = vld [vmem:[%s2072_s4 + $0xc8] ss:$16 sps:$4 sm:$0xff]   ;;  %v1855_v48 = vld [vmem:[%s2072_s4 + $0xe4] ss:$16 sps:$4 sm:$0xff]  }
  0x27   : > { %734 = vmatprep.subr.bf16.mxu0 %v1679_v18  ;;  %775 = vmatprep.subr.bf16.mxu1 %v1684_v19  ;;  %v1860_v49 = vld [vmem:[%s2072_s4 + $0xec] ss:$16 sps:$4 sm:$0xff]   ;;  %v1867_v50 = vld [vmem:[%s2072_s4 + $0xe0] ss:$16 sps:$4 sm:$0xff]   ;;  %v1872_v51 = vld [vmem:[%s2072_s4 + $0xe8] ss:$16 sps:$4 sm:$0xff]  }
  0x28   : > { %v1874_v52 = vld [vmem:[#allocation2] sm:$0xff]  ;;  %v304_v57 = vsub.s32 2, %v295_v55  ;;  %v308_v59 = vsub.s32 3, %v295_v55  ;;  %v300_v60 = vsub.s32 1, %v295_v55  ;;  %s964_s6 = sadd.s32 1, %s1616_s22  ;;  %s1085_s7 = sadd.s32 2, %s1616_s22 }
  0x29   : > { %1322 = vmatmul.mubr.msk.bf16.vlgmr.msra.gmra.mrb[0].mxu0 %vm404_vm0, %v1425_v20  ;;  %1324 = vmatmul.mubr.msk.bf16.vlgmr.msra.gmra.mrb[0].mxu1 %vm404_vm0, %v1425_v20  ;;  %v573_v53 = vpack.c.bf16 %v1874_v52, %v1874_v52  ;;  %v292_v58 = vld [vmem:[%s2071_s3] sm:$0xf]  ;;  %s1206_s8 = sadd.s32 3, %s1616_s22  ;;  %p1371_p6 = scmp.ne.s32.totalorder %s1553_s18, 1 }
  0x2a   : > { %735 = vmatpush1.bf16.msra.mxu0 %v1690_v21  ;;  %776 = vmatpush1.bf16.msra.mxu1 %v1695_v22  ;;  %v297_v61 = vrot.slane %v292_v58, %v296_v56  ;;  %v305_v62 = vrot.slane %v292_v58, %v304_v57  ;;  %v309_v1 = vrot.slane %v292_v58, %v308_v59 }
  0x2b   : > { %736 = vmatprep.subr.bf16.mxu0 %v1700_v23  ;;  %777 = vmatprep.subr.bf16.mxu1 %v1707_v24  ;;  %v301_v5 = vrot.slane %v292_v58, %v300_v60 }
  0x2c   : > { %453 = vmatprep.mubr.bf16.mxu0 %v2074_v3  ;;  %506 = vmatprep.mubr.bf16.mxu1 %v2074_v3 }
  0x2e   : > { %737 = vmatpush1.bf16.msra.mxu0 %v1714_v25  ;;  %778 = vmatpush1.bf16.msra.mxu1 %v1721_v26 }
  0x2f   : > { %738 = vmatprep.subr.bf16.mxu0 %v1728_v27  ;;  %779 = vmatprep.subr.bf16.mxu1 %v1733_v28 }
  0x31   : > { %1323 = vmatmul.mubr.msk.bf16.gmra.mrb[4].mxu0 %vm404_vm0, %v1460_v34  ;;  %1325 = vmatmul.mubr.msk.bf16.gmra.mrb[4].mxu1 %vm404_vm0, %v1460_v34 }
  0x32   : > { %739 = vmatpush1.bf16.msra.mxu0 %v1742_v29  ;;  %780 = vmatpush1.bf16.msra.mxu1 %v1747_v30 }
  0x33   : > { %740 = vmatprep.subr.bf16.mxu0 %v1752_v31  ;;  %781 = vmatprep.subr.bf16.mxu1 %v1759_v32 }
  0x34   : > { %766 = vmatprep.mubr.bf16.mxu0 %v2074_v3  ;;  %807 = vmatprep.mubr.bf16.mxu1 %v2074_v3 }
  0x36   : > { %741 = vmatpush1.bf16.msra.mxu0 %v1764_v33  ;;  %782 = vmatpush1.bf16.msra.mxu1 %v1772_v35 }
  0x37   : > { %742 = vmatprep.subr.bf16.mxu0 %v1777_v36  ;;  %783 = vmatprep.subr.bf16.mxu1 %v1784_v37 }
  0x3a   : > { %743 = vmatpush1.bf16.msra.mxu0 %v1791_v38  ;;  %784 = vmatpush1.bf16.msra.mxu1 %v1800_v39 }
  0x3b   : > { %744 = vmatprep.subr.bf16.mxu0 %v1807_v40  ;;  %785 = vmatprep.subr.bf16.mxu1 %v1812_v41 }
  0x3e   : > { %745 = vmatpush1.bf16.msra.mxu0 %v1819_v42  ;;  %786 = vmatpush1.bf16.msra.mxu1 %v1824_v43 }
  0x3f   : > { %746 = vmatprep.subr.bf16.mxu0 %v1831_v44  ;;  %787 = vmatprep.subr.bf16.mxu1 %v1836_v45 }
  0x42   : > { %747 = vmatpush1.bf16.msra.mxu0 %v1843_v46  ;;  %788 = vmatpush1.bf16.msra.mxu1 %v1848_v47 }
  0x43   : > { %748 = vmatprep.subr.bf16.mxu0 %v1855_v48  ;;  %789 = vmatprep.subr.bf16.mxu1 %v1860_v49 }
  0x46   : > { %749 = vmatpush1.bf16.msra.mxu0 %v1867_v50  ;;  %790 = vmatpush1.bf16.msra.mxu1 %v1872_v51 }
  0x47   : > { %854 = vmatprep.subr.bf16.mxu0 %v1679_v18  ;;  %895 = vmatprep.subr.bf16.mxu1 %v1684_v19 }
  0x49   : > { %767 = vmatmul.mubr.bf16.vlgmr.msra.gmra.mrb[8].mxu0 %v573_v53  ;;  %808 = vmatmul.mubr.bf16.vlgmr.msra.gmra.mrb[8].mxu1 %v573_v53 }
  0x4a   : > { %855 = vmatpush1.bf16.msra.mxu0 %v1690_v21  ;;  %896 = vmatpush1.bf16.msra.mxu1 %v1695_v22 }
  0x4b   : > { %856 = vmatprep.subr.bf16.mxu0 %v1700_v23  ;;  %897 = vmatprep.subr.bf16.mxu1 %v1707_v24 }
  0x4c   : > { %886 = vmatprep.mubr.bf16.mxu0 %v2074_v3  ;;  %927 = vmatprep.mubr.bf16.mxu1 %v2074_v3 }
  0x4e   : > { %857 = vmatpush1.bf16.msra.mxu0 %v1714_v25  ;;  %898 = vmatpush1.bf16.msra.mxu1 %v1721_v26 }
  0x4f   : > { %858 = vmatprep.subr.bf16.mxu0 %v1728_v27  ;;  %899 = vmatprep.subr.bf16.mxu1 %v1733_v28 }
  0x52   : > { %859 = vmatpush1.bf16.msra.mxu0 %v1742_v29  ;;  %900 = vmatpush1.bf16.msra.mxu1 %v1747_v30 }
  0x53   : > { %860 = vmatprep.subr.bf16.mxu0 %v1752_v31  ;;  %901 = vmatprep.subr.bf16.mxu1 %v1759_v32 }
  0x56   : > { %861 = vmatpush1.bf16.msra.mxu0 %v1764_v33  ;;  %902 = vmatpush1.bf16.msra.mxu1 %v1772_v35 }
  0x57   : > { %862 = vmatprep.subr.bf16.mxu0 %v1777_v36  ;;  %903 = vmatprep.subr.bf16.mxu1 %v1784_v37 }
  0x5a   : > { %863 = vmatpush1.bf16.msra.mxu0 %v1791_v38  ;;  %904 = vmatpush1.bf16.msra.mxu1 %v1800_v39 }
  0x5b   : > { %864 = vmatprep.subr.bf16.mxu0 %v1807_v40  ;;  %905 = vmatprep.subr.bf16.mxu1 %v1812_v41 }
  0x5e   : > { %865 = vmatpush1.bf16.msra.mxu0 %v1819_v42  ;;  %906 = vmatpush1.bf16.msra.mxu1 %v1824_v43 }
  0x5f   : > { %866 = vmatprep.subr.bf16.mxu0 %v1831_v44  ;;  %907 = vmatprep.subr.bf16.mxu1 %v1836_v45 }
  0x62   : > { %867 = vmatpush1.bf16.msra.mxu0 %v1843_v46  ;;  %908 = vmatpush1.bf16.msra.mxu1 %v1848_v47 }
  0x63   : > { %868 = vmatprep.subr.bf16.mxu0 %v1855_v48  ;;  %909 = vmatprep.subr.bf16.mxu1 %v1860_v49 }
  0x66   : > { %869 = vmatpush1.bf16.msra.mxu0 %v1867_v50  ;;  %910 = vmatpush1.bf16.msra.mxu1 %v1872_v51 }
  0x67   : > { %975 = vmatprep.subr.bf16.mxu0 %v1679_v18  ;;  %1016 = vmatprep.subr.bf16.mxu1 %v1684_v19 }
  0xfc   : > { %v445_v63 = vpop.f32.mrb[0].mxu0  ;;  %v498_v0 = vpop.f32.mrb[0].mxu1 }
  0xfd   : > { %v447_v2 = vpop.f32.mrb[1].mxu0  ;;  %v500_v4 = vpop.f32.mrb[1].mxu1 }
  0xfe   : > { %v449_v6 = vpop.f32.mrb[2].mxu0  ;;  %v502_v7 = vpop.f32.mrb[2].mxu1 }
  0xff   : > { %v1921_v8 = vadd.f32 %v449_v6, %v297_v61  ;;  %v451_v9 = vpop.f32.mrb[3].mxu0  ;;  %v1923_v10 = vadd.f32 %v502_v7, %v305_v62  ;;  %v504_v11 = vpop.f32.mrb[3].mxu1 }
 0x100   : > { %v1925_v12 = vadd.f32 %v451_v9, %v301_v5  ;;  %v1927_v13 = vadd.f32 %v504_v11, %v309_v1  ;;  %v446_v9 = vadd.f32 %v445_v63, %v297_v61  ;;  %v499_v11 = vadd.f32 %v498_v0, %v305_v62 }
 0x102   : > { %2076 = vst [vmem:[#allocation5_spill] sm:$0xff] %v1927_v13 }
 0x104   : > { %v455_v14 = vpop.f32.mrb[4].mxu0  ;;  %v508_v15 = vpop.f32.mrb[4].mxu1 }
 0x105   : > { %v1929_v16 = vadd.f32 %v455_v14, %v297_v61  ;;  %v457_v17 = vpop.f32.mrb[5].mxu0  ;;  %v1931_v20 = vadd.f32 %v508_v15, %v305_v62  ;;  %v510_v34 = vpop.f32.mrb[5].mxu1  ;;  %v448_v14 = vadd.f32 %v447_v2, %v301_v5  ;;  %v501_v15 = vadd.f32 %v500_v4, %v309_v1 }
 0x106   : > { %v1933_v53 = vadd.f32 %v457_v17, %v301_v5  ;;  %v459_v54 = vpop.f32.mrb[6].mxu0  ;;  %v1935_v55 = vadd.f32 %v510_v34, %v309_v1  ;;  %v512_v56 = vpop.f32.mrb[6].mxu1 }
 0x107   : > { %2077 = vst [vmem:[#allocation6_spill] sm:$0xff] %v1929_v16  ;;  %2078 = vst [vmem:[#allocation7_spill] sm:$0xff] %v1931_v20  ;;  %v1937_v57 = vadd.f32 %v459_v54, %v297_v61  ;;  %v461_v58 = vpop.f32.mrb[7].mxu0  ;;  %v1939_v59 = vadd.f32 %v512_v56, %v305_v62  ;;  %v514_v60 = vpop.f32.mrb[7].mxu1 }
 0x108   : > { %2079 = vst [vmem:[#allocation8_spill] sm:$0xff] %v1933_v53  ;;  %2080 = vst [vmem:[#allocation9_spill] sm:$0xff] %v1935_v55  ;;  %v1941_v6 = vadd.f32 %v461_v58, %v301_v5  ;;  %v1943_v7 = vadd.f32 %v514_v60, %v309_v1  ;;  %v568_v5 = vld [vmem:[#allocation3] sm:$0xff] }
 0x109   : > { %2081 = vst [vmem:[#allocation10_spill] sm:$0xff] %v1937_v57  ;;  %2082 = vst [vmem:[#allocation11_spill] sm:$0xff] %v1939_v59 }
 0x10a   : > { %2083 = vst [vmem:[#allocation12_spill] sm:$0xff] %v1941_v6 }
 0x11c   : > { %v768_v17 = vpop.f32.mrb[8].mxu0  ;;  %v809_v3 = vpop.f32.mrb[8].mxu1 }
 0x11d   : > { %v816_v53 = vadd.f32 %v768_v17, %v446_v9  ;;  %v818_v34 = vadd.f32 %v809_v3, %v499_v11  ;;  %v770_v55 = vpop.f32.mrb[9].mxu0  ;;  %v811_v20 = vpop.f32.mrb[9].mxu1  ;;  %v2084_v17 = vmov 0  }
 0x11e   : > { %v817_v54 = vadd.f32 %v770_v55, %v448_v14  ;;  %v819_v57 = vadd.f32 %v811_v20, %v501_v15  ;;  %v772_v16 = vpop.f32.mrb[10].mxu0  ;;  %v813_v56 = vpop.f32.mrb[10].mxu1  ;;  %v844_v20 = vstv %s1616_s22 }
 0x11f   : > { %v1359_v59 = vmul.f32 -1.442695, %v816_v53  ;;  %v773_v13 = vpop.f32.mrb[11].mxu0  ;;  %v814_v58 = vpop.f32.mrb[11].mxu1  ;;  %v1361_v61 = vmul.f32 -1.442695, %v818_v34 }
 0x120   : > { %v1360_v6 = vmul.f32 -1.442695, %v817_v54  ;;  %v1948_v13 = vld [vmem:[%s2069_s1] sm:$0xff] }
 0x121   : > { %1475 = vpow2.f32 %v1359_v59  ;;  %vm845_vm1 = vcmp.lt.s32.totalorder %v844_v20, %v1948_v13 }
 0x122   : > { %1477 = vpow2.f32 %v1360_v6 }
 0x123   : > { %1479 = vtanh.f32 %v819_v57 }
 0x124   : > { %1481 = vpow2.f32 %v1361_v61 }
 0x12b   : > { %v1476_v62 = vpop.eup %1475 }
 0x12c   : > { %v829_v63 = vadd.f32 1.0, %v1476_v62  ;;  %v1478_v0 = vpop.eup %1477 }
 0x12d   : > { %v830_v3 = vadd.f32 1.0, %v1478_v0  ;;  %v1480_v1 = vpop.eup %1479 }
 0x12e   : > { %1483 = vrcp.f32 %v829_v63  ;;  %v1482_v2 = vpop.eup %1481  ;;  %v2085_v63 = vld [vmem:[#allocation5_spill] sm:$0xff] }
 0x12f   : > { %1485 = vrcp.f32 %v830_v3  ;;  %v831_v55 = vadd.f32 1.0, %v1482_v2 }
 0x131   : > { %1487 = vrcp.f32 %v831_v55 }
 0x138   : > { %v1484_v4 = vpop.eup %1483 }
 0x139   : > { %v840_v16 = vmul.f32 %v1484_v4, %v1480_v1  ;;  %v1486_v53 = vpop.eup %1485 }
 0x13a   : > { %v839_v59 = vmul.f32 %v1486_v53, %v568_v5 }
 0x13b   : > { %v1488_v6 = vpop.eup %1487 }
 0x13c   : > { %v841_v57 = vadd.f32 %v840_v16, %v839_v59 }
 0x13e   : > { %1489 = vtanh.f32 %v841_v57  ;;  %v1952_v60 = vsel %vm845_vm1, %v841_v57, %v568_v5  ;;  %v965_v57 = vstv %s964_s6 }
 0x13f   : > { %vm966_vm2 = vcmp.lt.s32.totalorder %v965_v57, %v1948_v13 }
 0x148   : > { %v1490_v9 = vpop.eup %1489 }
 0x149   : > { %v843_v11 = vmul.f32 %v1490_v9, %v1488_v6 }
 0x14b   : > { %v1955_v14 = vsel %vm845_vm1, %v843_v11, %v1874_v52 }
 0x14c   : > { %v853_v15 = vpack.c.bf16 %v1955_v14, %v1955_v14 }
 0x14e   : > { %887 = vmatmul.mubr.bf16.vlgmr.msra.gmra.mrb[12].mxu0 %v853_v15  ;;  %928 = vmatmul.mubr.bf16.vlgmr.msra.gmra.mrb[12].mxu1 %v853_v15 }
 0x14f   : > { %976 = vmatpush1.bf16.msra.mxu0 %v1690_v21  ;;  %1017 = vmatpush1.bf16.msra.mxu1 %v1695_v22 }
 0x150   : > { %977 = vmatprep.subr.bf16.mxu0 %v1700_v23  ;;  %1018 = vmatprep.subr.bf16.mxu1 %v1707_v24 }
 0x151   : > { %1007 = vmatprep.mubr.bf16.mxu0 %v2084_v17  ;;  %1048 = vmatprep.mubr.bf16.mxu1 %v2084_v17 }
 0x153   : > { %978 = vmatpush1.bf16.msra.mxu0 %v1714_v25  ;;  %1019 = vmatpush1.bf16.msra.mxu1 %v1721_v26 }
 0x154   : > { %979 = vmatprep.subr.bf16.mxu0 %v1728_v27  ;;  %1020 = vmatprep.subr.bf16.mxu1 %v1733_v28 }
 0x157   : > { %980 = vmatpush1.bf16.msra.mxu0 %v1742_v29  ;;  %1021 = vmatpush1.bf16.msra.mxu1 %v1747_v30 }
 0x158   : > { %981 = vmatprep.subr.bf16.mxu0 %v1752_v31  ;;  %1022 = vmatprep.subr.bf16.mxu1 %v1759_v32 }
 0x15b   : > { %982 = vmatpush1.bf16.msra.mxu0 %v1764_v33  ;;  %1023 = vmatpush1.bf16.msra.mxu1 %v1772_v35 }
 0x15c   : > { %983 = vmatprep.subr.bf16.mxu0 %v1777_v36  ;;  %1024 = vmatprep.subr.bf16.mxu1 %v1784_v37 }
 0x15f   : > { %984 = vmatpush1.bf16.msra.mxu0 %v1791_v38  ;;  %1025 = vmatpush1.bf16.msra.mxu1 %v1800_v39 }
 0x160   : > { %985 = vmatprep.subr.bf16.mxu0 %v1807_v40  ;;  %1026 = vmatprep.subr.bf16.mxu1 %v1812_v41 }
 0x163   : > { %986 = vmatpush1.bf16.msra.mxu0 %v1819_v42  ;;  %1027 = vmatpush1.bf16.msra.mxu1 %v1824_v43 }
 0x164   : > { %987 = vmatprep.subr.bf16.mxu0 %v1831_v44  ;;  %1028 = vmatprep.subr.bf16.mxu1 %v1836_v45 }
 0x167   : > { %988 = vmatpush1.bf16.msra.mxu0 %v1843_v46  ;;  %1029 = vmatpush1.bf16.msra.mxu1 %v1848_v47 }
 0x168   : > { %989 = vmatprep.subr.bf16.mxu0 %v1855_v48  ;;  %1030 = vmatprep.subr.bf16.mxu1 %v1860_v49 }
 0x16b   : > { %990 = vmatpush1.bf16.msra.mxu0 %v1867_v50  ;;  %1031 = vmatpush1.bf16.msra.mxu1 %v1872_v51 }
 0x16c   : > { %1096 = vmatprep.subr.bf16.mxu0 %v1679_v18  ;;  %1137 = vmatprep.subr.bf16.mxu1 %v1684_v19 }
 0x221   : > { %v888_v52 = vpop.f32.mrb[12].mxu0  ;;  %v929_v34 = vpop.f32.mrb[12].mxu1 }
 0x222   : > { %v936_v54 = vadd.f32 %v888_v52, %v1921_v8  ;;  %v938_v56 = vadd.f32 %v929_v34, %v1923_v10  ;;  %v890_v58 = vpop.f32.mrb[13].mxu0  ;;  %v931_v61 = vpop.f32.mrb[13].mxu1 }
 0x223   : > { %v937_v62 = vadd.f32 %v890_v58, %v1925_v12  ;;  %v939_v0 = vadd.f32 %v931_v61, %v2085_v63  ;;  %v892_v3 = vpop.f32.mrb[14].mxu0  ;;  %v933_v1 = vpop.f32.mrb[14].mxu1 }
 0x224   : > { %v1362_v2 = vmul.f32 -1.442695, %v936_v54  ;;  %v893_v4 = vpop.f32.mrb[15].mxu0  ;;  %v934_v18 = vpop.f32.mrb[15].mxu1  ;;  %v1364_v19 = vmul.f32 -1.442695, %v938_v56 }
 0x225   : > { %v1363_v5 = vmul.f32 -1.442695, %v937_v62  ;;  %v2090_v18 = vld [vmem:[#allocation10_spill] sm:$0xff] }
 0x226   : > { %1491 = vpow2.f32 %v1362_v2 }
 0x227   : > { %1493 = vpow2.f32 %v1363_v5 }
 0x228   : > { %1495 = vtanh.f32 %v939_v0 }
 0x229   : > { %1497 = vpow2.f32 %v1364_v19  ;;  %v2091_v19 = vld [vmem:[#allocation11_spill] sm:$0xff] }
 0x230   : > { %v1492_v16 = vpop.eup %1491 }
 0x231   : > { %v949_v8 = vadd.f32 1.0, %v1492_v16  ;;  %v1494_v10 = vpop.eup %1493 }
 0x232   : > { %v950_v20 = vadd.f32 1.0, %v1494_v10  ;;  %v1496_v12 = vpop.eup %1495 }
 0x233   : > { %1499 = vrcp.f32 %v949_v8  ;;  %v1498_v53 = vpop.eup %1497 }
 0x234   : > { %1501 = vrcp.f32 %v950_v20  ;;  %v951_v9 = vadd.f32 1.0, %v1498_v53  ;;  %v2092_v20 = vld [vmem:[#allocation12_spill] sm:$0xff] }
 0x236   : > { %1503 = vrcp.f32 %v951_v9 }
 0x23d   : > { %v1500_v55 = vpop.eup %1499 }
 0x23e   : > { %v960_v59 = vmul.f32 %v1500_v55, %v1496_v12  ;;  %v1502_v6 = vpop.eup %1501 }
 0x23f   : > { %v959_v11 = vmul.f32 %v1502_v6, %v1952_v60 }
 0x240   : > { %v1504_v34 = vpop.eup %1503 }
 0x241   : > { %v961_v15 = vadd.f32 %v960_v59, %v959_v11 }
 0x243   : > { %1505 = vtanh.f32 %v961_v15  ;;  %v2001_v52 = vsel %vm966_vm2, %v961_v15, %v1952_v60 }
 0x24d   : > { %v1506_v54 = vpop.eup %1505 }
 0x24e   : > { %v963_v56 = vmul.f32 %v1506_v54, %v1504_v34 }
 0x250   : > { %v2004_v58 = vsel %vm966_vm2, %v963_v56, %v1955_v14 }
 0x251   : > { %v974_v61 = vpack.c.bf16 %v2004_v58, %v2004_v58 }
 0x253   : > { %1008 = vmatmul.mubr.bf16.vlgmr.msra.gmra.mrb[16].mxu0 %v974_v61  ;;  %1049 = vmatmul.mubr.bf16.vlgmr.msra.gmra.mrb[16].mxu1 %v974_v61 }
 0x254   : > { %1097 = vmatpush1.bf16.msra.mxu0 %v1690_v21  ;;  %1138 = vmatpush1.bf16.msra.mxu1 %v1695_v22 }
 0x255   : > { %1098 = vmatprep.subr.bf16.mxu0 %v1700_v23  ;;  %1139 = vmatprep.subr.bf16.mxu1 %v1707_v24  ;;  %v2086_v23 = vld [vmem:[#allocation6_spill] sm:$0xff] }
 0x256   : > { %1128 = vmatprep.mubr.bf16.mxu0 %v2084_v17  ;;  %1169 = vmatprep.mubr.bf16.mxu1 %v2084_v17 }
 0x258   : > { %1099 = vmatpush1.bf16.msra.mxu0 %v1714_v25  ;;  %1140 = vmatpush1.bf16.msra.mxu1 %v1721_v26  ;;  %v2087_v25 = vld [vmem:[#allocation7_spill] sm:$0xff] }
 0x259   : > { %1100 = vmatprep.subr.bf16.mxu0 %v1728_v27  ;;  %1141 = vmatprep.subr.bf16.mxu1 %v1733_v28 }
 0x25c   : > { %1101 = vmatpush1.bf16.msra.mxu0 %v1742_v29  ;;  %1142 = vmatpush1.bf16.msra.mxu1 %v1747_v30  ;;  %v2088_v29 = vld [vmem:[#allocation8_spill] sm:$0xff] }
 0x25d   : > { %1102 = vmatprep.subr.bf16.mxu0 %v1752_v31  ;;  %1143 = vmatprep.subr.bf16.mxu1 %v1759_v32  ;;  %v2089_v31 = vld [vmem:[#allocation9_spill] sm:$0xff] }
 0x260   : > { %1103 = vmatpush1.bf16.msra.mxu0 %v1764_v33  ;;  %1144 = vmatpush1.bf16.msra.mxu1 %v1772_v35 }
 0x261   : > { %1104 = vmatprep.subr.bf16.mxu0 %v1777_v36  ;;  %1145 = vmatprep.subr.bf16.mxu1 %v1784_v37 }
 0x264   : > { %1105 = vmatpush1.bf16.msra.mxu0 %v1791_v38  ;;  %1146 = vmatpush1.bf16.msra.mxu1 %v1800_v39 }
 0x265   : > { %1106 = vmatprep.subr.bf16.mxu0 %v1807_v40  ;;  %1147 = vmatprep.subr.bf16.mxu1 %v1812_v41 }
 0x268   : > { %1107 = vmatpush1.bf16.msra.mxu0 %v1819_v42  ;;  %1148 = vmatpush1.bf16.msra.mxu1 %v1824_v43 }
 0x269   : > { %1108 = vmatprep.subr.bf16.mxu0 %v1831_v44  ;;  %1149 = vmatprep.subr.bf16.mxu1 %v1836_v45 }
 0x26c   : > { %1109 = vmatpush1.bf16.msra.mxu0 %v1843_v46  ;;  %1150 = vmatpush1.bf16.msra.mxu1 %v1848_v47 }
 0x26d   : > { %1110 = vmatprep.subr.bf16.mxu0 %v1855_v48  ;;  %1151 = vmatprep.subr.bf16.mxu1 %v1860_v49  ;;  %v1086_v49 = vstv %s1085_s7 }
 0x26e   : > { %vm1087_vm3 = vcmp.lt.s32.totalorder %v1086_v49, %v1948_v13 }
 0x270   : > { %1111 = vmatpush1.bf16.msra.mxu0 %v1867_v50  ;;  %1152 = vmatpush1.bf16.msra.mxu1 %v1872_v51 }
 0x326   : > { %v1009_v21 = vpop.f32.mrb[16].mxu0  ;;  %v1050_v22 = vpop.f32.mrb[16].mxu1 }
 0x327   : > { %v1057_v24 = vadd.f32 %v1009_v21, %v2086_v23  ;;  %v1059_v26 = vadd.f32 %v1050_v22, %v2087_v25  ;;  %v1011_v27 = vpop.f32.mrb[17].mxu0  ;;  %v1052_v28 = vpop.f32.mrb[17].mxu1  ;;  %v1207_v21 = vstv %s1206_s8 }
 0x328   : > { %v1058_v30 = vadd.f32 %v1011_v27, %v2088_v29  ;;  %v1060_v32 = vadd.f32 %v1052_v28, %v2089_v31  ;;  %v1013_v33 = vpop.f32.mrb[18].mxu0  ;;  %v1054_v35 = vpop.f32.mrb[18].mxu1  ;;  %vm1208_vm4 = vcmp.lt.s32.totalorder %v1207_v21, %v1948_v13 }
 0x329   : > { %v1365_v36 = vmul.f32 -1.442695, %v1057_v24  ;;  %v1014_v37 = vpop.f32.mrb[19].mxu0  ;;  %v1055_v38 = vpop.f32.mrb[19].mxu1  ;;  %v1367_v40 = vmul.f32 -1.442695, %v1059_v26 }
 0x32a   : > { %v1366_v39 = vmul.f32 -1.442695, %v1058_v30 }
 0x32b   : > { %1507 = vpow2.f32 %v1365_v36 }
 0x32c   : > { %1509 = vpow2.f32 %v1366_v39 }
 0x32d   : > { %1511 = vtanh.f32 %v1060_v32 }
 0x32e   : > { %1513 = vpow2.f32 %v1367_v40 }
 0x335   : > { %v1508_v41 = vpop.eup %1507 }
 0x336   : > { %v1070_v42 = vadd.f32 1.0, %v1508_v41  ;;  %v1510_v43 = vpop.eup %1509 }
 0x337   : > { %v1071_v44 = vadd.f32 1.0, %v1510_v43  ;;  %v1512_v45 = vpop.eup %1511 }
 0x338   : > { %1515 = vrcp.f32 %v1070_v42  ;;  %v1514_v46 = vpop.eup %1513 }
 0x339   : > { %1517 = vrcp.f32 %v1071_v44  ;;  %v1072_v51 = vadd.f32 1.0, %v1514_v46 }
 0x33b   : > { %1519 = vrcp.f32 %v1072_v51 }
 0x342   : > { %v1516_v47 = vpop.eup %1515 }
 0x343   : > { %v1081_v48 = vmul.f32 %v1516_v47, %v1512_v45  ;;  %v1518_v50 = vpop.eup %1517 }
 0x344   : > { %v1080_v60 = vmul.f32 %v1518_v50, %v2001_v52 }
 0x345   : > { %v1520_v62 = vpop.eup %1519 }
 0x346   : > { %v1082_v14 = vadd.f32 %v1081_v48, %v1080_v60 }
 0x348   : > { %1521 = vtanh.f32 %v1082_v14  ;;  %v1089_v17 = vsel %vm1087_vm3, %v1082_v14, %v2001_v52 }
 0x352   : > { %v1522_v63 = vpop.eup %1521 }
 0x353   : > { %v1084_v0 = vmul.f32 %v1522_v63, %v1520_v62 }
 0x355   : > { %v1088_v3 = vsel %vm1087_vm3, %v1084_v0, %v2004_v58 }
 0x356   : > { %v1095_v1 = vpack.c.bf16 %v1088_v3, %v1088_v3 }
 0x358   : > { %1129 = vmatmul.mubr.bf16.vlgmr.msra.gmra.mrb[20].mxu0 %v1095_v1  ;;  %1170 = vmatmul.mubr.bf16.vlgmr.msra.gmra.mrb[20].mxu1 %v1095_v1 }
 0x42b   : > { %v1130_v2 = vpop.f32.mrb[20].mxu0  ;;  %v1171_v4 = vpop.f32.mrb[20].mxu1 }
 0x42c   : > { %v1178_v5 = vadd.f32 %v1130_v2, %v2090_v18  ;;  %v1180_v16 = vadd.f32 %v1171_v4, %v2091_v19  ;;  %v1132_v8 = vpop.f32.mrb[21].mxu0  ;;  %v1173_v10 = vpop.f32.mrb[21].mxu1 }
 0x42d   : > { %v1179_v12 = vadd.f32 %v1132_v8, %v2092_v20  ;;  %v1181_v53 = vadd.f32 %v1173_v10, %v1943_v7  ;;  %v1134_v55 = vpop.f32.mrb[22].mxu0  ;;  %v1175_v59 = vpop.f32.mrb[22].mxu1 }
 0x42e   : > { %v1368_v57 = vmul.f32 -1.442695, %v1178_v5  ;;  %v1135_v6 = vpop.f32.mrb[23].mxu0  ;;  %v1176_v9 = vpop.f32.mrb[23].mxu1  ;;  %v1370_v15 = vmul.f32 -1.442695, %v1180_v16 }
 0x42f   : > { %v1369_v11 = vmul.f32 -1.442695, %v1179_v12 }
 0x430   : > { %1523 = vpow2.f32 %v1368_v57 }
 0x431   : > { %1525 = vpow2.f32 %v1369_v11 }
 0x432   : > { %1527 = vtanh.f32 %v1181_v53 }
 0x433   : > { %1529 = vpow2.f32 %v1370_v15 }
 0x43a   : > { %v1524_v52 = vpop.eup %1523 }
 0x43b   : > { %v1191_v34 = vadd.f32 1.0, %v1524_v52  ;;  %v1526_v54 = vpop.eup %1525 }
 0x43c   : > { %v1192_v56 = vadd.f32 1.0, %v1526_v54  ;;  %v1528_v58 = vpop.eup %1527 }
 0x43d   : > { %1531 = vrcp.f32 %v1191_v34  ;;  %v1530_v7 = vpop.eup %1529 }
 0x43e   : > { %1533 = vrcp.f32 %v1192_v56  ;;  %v1193_v24 = vadd.f32 1.0, %v1530_v7 }
 0x440   : > { %1535 = vrcp.f32 %v1193_v24 }
 0x447   : > { %v1532_v61 = vpop.eup %1531 }
 0x448   : > { %v1202_v22 = vmul.f32 %v1532_v61, %v1528_v58  ;;  %v1534_v23 = vpop.eup %1533 }
 0x449   : > { %v1201_v25 = vmul.f32 %v1534_v23, %v1089_v17 }
 0x44a   : > { %v1536_v28 = vpop.eup %1535 }
 0x44b   : > { %v1203_v26 = vadd.f32 %v1202_v22, %v1201_v25 }
 0x44d   : > { %1537 = vtanh.f32 %v1203_v26  ;;  %v1210_v27 = vsel %vm1208_vm4, %v1203_v26, %v1089_v17 }
 0x44e   : > { %1212 = vst [vmem:[#allocation3] sm:$0xff] %v1210_v27 }
 0x455   : > { %1216 = sbr.rel (%p1371_p6) target bundleno = 1124 (0x464), region = 48 }
 0x457   : > { %v1538_v29 = vpop.eup %1537 }
 0x458   : > { %v1205_v30 = vmul.f32 %v1538_v29, %v1536_v28 }
 0x45a   : > { %v1209_v31 = vsel %vm1208_vm4, %v1205_v30, %v1088_v3 }
 0x45b   : > { %1211 = vst [vmem:[#allocation2] sm:$0xff] %v1209_v31 }
 0x462   : > { %v1217_v32 = vld [vmem:[#allocation2] sm:$0xff] }
 0x463   : > { %1218 = vst [vmem:[%s2073_s5] sm:$0xff] %v1217_v32 }
 0x464 PF: > { %s15_s20 = sadd.s32 1, %s1561_s20   ;;  %s2093_s18 = smov %s1557_s19 }
 0x465   : > { %p12_p7 = scmp.ge.s32.totalorder %s15_s20, 4   ;;  %s2094_s19 = smov %s2096_s21 }
 0x467   :  { %14 = sbr.rel (!%p12_p7) target bundleno = 2 (0x2), region = 84 }

</bundles_post_ra>
